<compile_context>
chip_gen: v5e
topology: v5e:2x2
jax: 0.10.0
libtpu: 0.0.40
codegen_flags: <defaults>
</compile_context>

<pallas_src>
import jax
import jax.numpy as jnp
from jax.experimental import pallas as pl
from jax.experimental.pallas import tpu as pltpu


def dqn_2lx_kernel(x_ref, w1_ref, b1_ref, w2_ref, b2_ref, w3_ref, b3_ref, o_ref):
    x = x_ref[...]  # streaming dtype (f32 or bf16); no redundant cast

    # linear1 + ReLU (f32 accumulation on the MXU)
    h1 = jnp.dot(x, w1_ref[...], preferred_element_type=jnp.float32) + b1_ref[...]
    h1 = jnp.maximum(h1, 0.0)

    # linear2 + ReLU
    h2 = jnp.dot(h1.astype(w2_ref.dtype), w2_ref[...],
                 preferred_element_type=jnp.float32) + b2_ref[...]
    h2 = jnp.maximum(h2, 0.0)

    # linear3
    logits = jnp.dot(h2.astype(w3_ref.dtype), w3_ref[...],
                     preferred_element_type=jnp.float32) + b3_ref[...]

    # softmax over dim=1 (last axis), numerically stable.
    m = jnp.max(logits, axis=-1, keepdims=True)
    e = jnp.exp(logits - m)
    denom = jnp.sum(e, axis=-1, keepdims=True)
    # Exact reciprocal: rows must sum to 1 (approx=True drifted ~2e-3).
    o_ref[...] = (e * pl.reciprocal(denom, approx=False)).astype(o_ref.dtype)
    # TODO(synk): v5e-specific lane-dense output (pack 16 rows x 8 logits into
    # one 128-lane row) would remove masked vst.msk stores; skipped here since
    # the (TB,8)->(TB//16,128) repack needs XLU relayout and the output stream
    # is a small fraction of total HBM traffic at these widths.


def _round_up(n, m):
    return ((n + m - 1) // m) * m


def _round_down(n, m):
    return max(m, (n // m) * m)


_VMEM_BUDGET_BYTES = 24 * 1024 * 1024  # conservative: fits v7x 32 MiB scoped default


def dqn_2lx_forward(x, params, *, block_b=4096, use_bf16=True):
    """x: (B, inputs).  params: dict of transposed weights (in, out) + biases (1, out)."""
    w1, b1, w2, b2, w3, b3 = (
        params["w1"], params["b1"], params["w2"],
        params["b2"], params["w3"], params["b3"],
    )
    B, F = x.shape
    width = w1.shape[1]
    outputs = w3.shape[1]

    if use_bf16:
        # Halve the dominant HBM streams; f32 accumulation stays in the kernel.
        x = x.astype(jnp.bfloat16)
        w1 = w1.astype(jnp.bfloat16)
        w2 = w2.astype(jnp.bfloat16)
        w3 = w3.astype(jnp.bfloat16)

    x_itemsize = jnp.dtype(x.dtype).itemsize
    weight_bytes = sum(int(a.size) * jnp.dtype(a.dtype).itemsize
                       for a in (w1, b1, w2, b2, w3, b3))

    # --- VMEM-aware batch tile --------------------------------------------
    # double-buffered x + out blocks, single-buffered f32 h1/h2 intermediates,
    # plus resident weights (counted twice to be conservative).
    per_row = 2 * F * x_itemsize + 2 * outputs * 4 + 2 * width * 4
    budget = max(_VMEM_BUDGET_BYTES - 2 * weight_bytes, 1 << 20)
    tb_cap = max(8, budget // per_row)

    if B < 8:
        TB = B                                   # full-dim block, always legal
    else:
        TB = min(block_b, tb_cap, B)
        TB = _round_down(TB, 256) if TB >= 256 else _round_down(TB, 8)

    grid = (pl.cdiv(B, TB),)                     # ragged last block handled by Pallas

    cost = pl.CostEstimate(
        flops=int(2 * B * (F * width + width * width + width * outputs)),
        transcendentals=int(B * outputs),
        bytes_accessed=int(B * F * x_itemsize + B * outputs * 4 + weight_bytes),
    )

    out_shape = jax.ShapeDtypeStruct((B, outputs), jnp.float32)
    x_spec = pl.BlockSpec((TB, F), lambda i: (i, 0))
    out_spec = pl.BlockSpec((TB, outputs), lambda i: (i, 0))

    def resident(a, single_buffer):
        # Constant index_map -> stays in VMEM, never re-DMA'd across grid steps.
        if single_buffer:
            return pl.BlockSpec(a.shape, lambda i: (0, 0),
                                pipeline_mode=pl.Buffered(buffer_count=1))
        return pl.BlockSpec(a.shape, lambda i: (0, 0))

    def build(dim_sem, single_buffer_weights, with_compiler_params):
        in_specs = [x_spec] + [resident(a, single_buffer_weights)
                               for a in (w1, b1, w2, b2, w3, b3)]
        kwargs = dict(
            out_shape=out_shape,
            grid=grid,
            in_specs=in_specs,
            out_specs=out_spec,
            cost_estimate=cost,
        )
        if with_compiler_params:
            kwargs["compiler_params"] = pltpu.CompilerParams(
                dimension_semantics=dim_sem,
                vmem_limit_bytes=32 * 1024 * 1024,
            )
        return pl.pallas_call(dqn_2lx_kernel, **kwargs)

    # Config ladder: fastest first, most conservative last.  The last entry is
    # a bare pallas_call (no compiler params / pipeline_mode) that runs on any
    # backend, including interpret mode.
    configs = []
    core_parallel = getattr(pltpu, "CORE_PARALLEL", None)
    if grid[0] >= 2 and core_parallel is not None:
        configs.append(((core_parallel,), True, True))   # shard tiles across v7x TCs
    configs.append((("parallel",), True, True))
    configs.append((("arbitrary",), False, False))

    last_err = None
    for dim_sem, single_buf, with_cp in configs:
        try:
            out = build(dim_sem, single_buf, with_cp)(x, w1, b1, w2, b2, w3, b3)
            # Block here so runtime/lowering failures trigger the fallback.
            # (Drop the block + fallback ladder when wrapping in jit.)
            return jax.block_until_ready(out)
        except Exception as err:  # noqa: BLE001 - fall back to safer config
            last_err = err
    raise last_err


def init_params(key, inputs, outputs, width):
    """Mimics PyTorch nn.Linear default init U(-1/sqrt(fan_in), +).
    Weights stored transposed: shape (in, out); biases (1, out)."""
    ks = jax.random.split(key, 6)

    def linear(kw, kb, fan_in, fan_out):
        bound = 1.0 / jnp.sqrt(fan_in)
        w = jax.random.uniform(kw, (fan_in, fan_out), jnp.float32, -bound, bound)
        b = jax.random.uniform(kb, (1, fan_out), jnp.float32, -bound, bound)
        return w, b

    w1, b1 = linear(ks[0], ks[1], inputs, width)
    w2, b2 = linear(ks[2], ks[3], width, width)
    w3, b3 = linear(ks[4], ks[5], width, outputs)
    return {"w1": w1, "b1": b1, "w2": w2, "b2": b2, "w3": w3, "b3": b3}


def dqn_2lx_reference(x, params):
    """Pure-JAX reference (matches the PyTorch forward)."""
    h1 = jnp.maximum(x @ params["w1"] + params["b1"], 0.0)
    h2 = jnp.maximum(h1 @ params["w2"] + params["b2"], 0.0)
    logits = h2 @ params["w3"] + params["b3"]
    return jax.nn.softmax(logits, axis=-1)


if __name__ == "__main__":
    key = jax.random.PRNGKey(0)
    k_x, k_p, k_x2 = jax.random.split(key, 3)

    batch, inputs, outputs, width = 8, 16, 8, 32

    x = jax.random.normal(k_x, (batch, inputs), jnp.float32)
    params = init_params(k_p, inputs, outputs, width)
    ref = dqn_2lx_reference(x, params)

    # 1) f32 path: strict parity with the PyTorch float32 forward.
    out_f32 = dqn_2lx_forward(x, params, use_bf16=False)
    jax.block_until_ready(out_f32)
    assert out_f32.shape == (batch, outputs)
    row_sums = jnp.sum(out_f32, axis=1)
    assert bool(jnp.all(jnp.abs(row_sums - 1.0) < 1e-4)), row_sums
    assert bool(jnp.all(jnp.abs(out_f32 - ref) < 5e-3)), jnp.max(jnp.abs(out_f32 - ref))

    # 2) Default fast path: bf16 streaming with f32 accumulation.
    out_bf16 = dqn_2lx_forward(x, params)
    jax.block_until_ready(out_bf16)
    row_sums = jnp.sum(out_bf16, axis=1)
    assert bool(jnp.all(jnp.abs(row_sums - 1.0) < 1e-4)), row_sums
    assert bool(jnp.all(jnp.abs(out_bf16 - ref) < 3e-2)), jnp.max(jnp.abs(out_bf16 - ref))

    # 3) Multi-tile grid + ragged last batch block (no wrapper-side padding).
    B2 = 40
    x2 = jax.random.normal(k_x2, (B2, inputs), jnp.float32)
    ref2 = dqn_2lx_reference(x2, params)
    out2 = dqn_2lx_forward(x2, params, block_b=16)   # grid = 3, last block ragged
    jax.block_until_ready(out2)
    assert out2.shape == (B2, outputs)
    assert bool(jnp.all(jnp.abs(out2 - ref2) < 3e-2)), jnp.max(jnp.abs(out2 - ref2))

    print("KERNEL_OK")
</pallas_src>

<mosaic_0001>
module attributes {stable_mosaic.version = 11 : i64} {
  func.func @dqn_2lx_kernel(%arg0: i32, %arg1: memref<8x16xf32, #tpu.memory_space<vmem>>, %arg2: memref<16x32xf32, #tpu.memory_space<vmem>>, %arg3: memref<1x32xf32, #tpu.memory_space<vmem>>, %arg4: memref<32x32xf32, #tpu.memory_space<vmem>>, %arg5: memref<1x32xf32, #tpu.memory_space<vmem>>, %arg6: memref<32x8xf32, #tpu.memory_space<vmem>>, %arg7: memref<1x8xf32, #tpu.memory_space<vmem>>, %arg8: memref<8x8xf32, #tpu.memory_space<vmem>>) attributes {dimension_semantics = [#tpu.dimension_semantics<parallel>], iteration_bounds = array<i64: 1>, scalar_prefetch = 0 : i64, scratch_operands = 0 : i64, tpu.core_type = #tpu.core_type<tc>, window_params = [{transform_indices = @transform_0, window_bounds = array<i64: 8, 16>}, {pipeline_mode = #tpu.pipeline_mode<synchronous>, transform_indices = @transform_1, window_bounds = array<i64: 16, 32>}, {pipeline_mode = #tpu.pipeline_mode<synchronous>, transform_indices = @transform_2, window_bounds = array<i64: 1, 32>}, {pipeline_mode = #tpu.pipeline_mode<synchronous>, transform_indices = @transform_3, window_bounds = array<i64: 32, 32>}, {pipeline_mode = #tpu.pipeline_mode<synchronous>, transform_indices = @transform_4, window_bounds = array<i64: 1, 32>}, {pipeline_mode = #tpu.pipeline_mode<synchronous>, transform_indices = @transform_5, window_bounds = array<i64: 32, 8>}, {pipeline_mode = #tpu.pipeline_mode<synchronous>, transform_indices = @transform_6, window_bounds = array<i64: 1, 8>}, {transform_indices = @transform_7, window_bounds = array<i64: 8, 8>}]} {
    %c0 = arith.constant 0 : index
    %c0_0 = arith.constant 0 : index
    %0 = vector.load %arg1[%c0, %c0_0] : memref<8x16xf32, #tpu.memory_space<vmem>>, vector<8x16xf32>
    %c0_1 = arith.constant 0 : index
    %c0_2 = arith.constant 0 : index
    %1 = vector.load %arg2[%c0_1, %c0_2] : memref<16x32xf32, #tpu.memory_space<vmem>>, vector<16x32xf32>
    %cst = arith.constant dense<0.000000e+00> : vector<8x32xf32>
    %2 = tpu.matmul %0, %1, %cst {dimension_numbers = #tpu.dot_dimension_numbers<[1], [0], [0], [1], [0, 0, 1, 1], [], []>} : vector<8x16xf32>, vector<16x32xf32>, vector<8x32xf32> -> vector<8x32xf32>
    %c0_3 = arith.constant 0 : index
    %c0_4 = arith.constant 0 : index
    %3 = vector.load %arg3[%c0_3, %c0_4] : memref<1x32xf32, #tpu.memory_space<vmem>>, vector<1x32xf32>
    %4 = vector.broadcast %3 : vector<1x32xf32> to vector<8x32xf32>
    %5 = arith.addf %2, %4 : vector<8x32xf32>
    %cst_5 = arith.constant 0.000000e+00 : f32
    %6 = vector.broadcast %cst_5 : f32 to vector<8x32xf32>
    %7 = arith.maximumf %5, %6 : vector<8x32xf32>
    %c0_6 = arith.constant 0 : index
    %c0_7 = arith.constant 0 : index
    %8 = vector.load %arg4[%c0_6, %c0_7] : memref<32x32xf32, #tpu.memory_space<vmem>>, vector<32x32xf32>
    %cst_8 = arith.constant dense<0.000000e+00> : vector<8x32xf32>
    %9 = tpu.matmul %7, %8, %cst_8 {dimension_numbers = #tpu.dot_dimension_numbers<[1], [0], [0], [1], [0, 0, 1, 1], [], []>} : vector<8x32xf32>, vector<32x32xf32>, vector<8x32xf32> -> vector<8x32xf32>
    %c0_9 = arith.constant 0 : index
    %c0_10 = arith.constant 0 : index
    %10 = vector.load %arg5[%c0_9, %c0_10] : memref<1x32xf32, #tpu.memory_space<vmem>>, vector<1x32xf32>
    %11 = vector.broadcast %10 : vector<1x32xf32> to vector<8x32xf32>
    %12 = arith.addf %9, %11 : vector<8x32xf32>
    %cst_11 = arith.constant 0.000000e+00 : f32
    %13 = vector.broadcast %cst_11 : f32 to vector<8x32xf32>
    %14 = arith.maximumf %12, %13 : vector<8x32xf32>
    %c0_12 = arith.constant 0 : index
    %c0_13 = arith.constant 0 : index
    %15 = vector.load %arg6[%c0_12, %c0_13] : memref<32x8xf32, #tpu.memory_space<vmem>>, vector<32x8xf32>
    %cst_14 = arith.constant dense<0.000000e+00> : vector<8x8xf32>
    %16 = tpu.matmul %14, %15, %cst_14 {dimension_numbers = #tpu.dot_dimension_numbers<[1], [0], [0], [1], [0, 0, 1, 1], [], []>} : vector<8x32xf32>, vector<32x8xf32>, vector<8x8xf32> -> vector<8x8xf32>
    %c0_15 = arith.constant 0 : index
    %c0_16 = arith.constant 0 : index
    %17 = vector.load %arg7[%c0_15, %c0_16] : memref<1x8xf32, #tpu.memory_space<vmem>>, vector<1x8xf32>
    %18 = vector.broadcast %17 : vector<1x8xf32> to vector<8x8xf32>
    %19 = arith.addf %16, %18 : vector<8x8xf32>
    %cst_17 = arith.constant dense<0xFF800000> : vector<8xf32>
    %20 = vector.multi_reduction <maximumf>, %19, %cst_17 [1] : vector<8x8xf32> to vector<8xf32>
    %21 = vector.shape_cast %20 : vector<8xf32> to vector<8x1xf32>
    %22 = vector.broadcast %21 : vector<8x1xf32> to vector<8x8xf32>
    %23 = arith.subf %19, %22 : vector<8x8xf32>
    %24 = math.exp %23 : vector<8x8xf32>
    %cst_18 = arith.constant dense<0.000000e+00> : vector<8xf32>
    %25 = vector.multi_reduction <add>, %24, %cst_18 [1] : vector<8x8xf32> to vector<8xf32>
    %26 = vector.shape_cast %25 : vector<8xf32> to vector<8x1xf32>
    %27 = tpu.reciprocal %26 : vector<8x1xf32> -> vector<8x1xf32>
    %28 = vector.broadcast %27 : vector<8x1xf32> to vector<8x8xf32>
    %29 = arith.mulf %24, %28 : vector<8x8xf32>
    %c0_19 = arith.constant 0 : index
    %c0_20 = arith.constant 0 : index
    %30 = vector.load %arg8[%c0_19, %c0_20] : memref<8x8xf32, #tpu.memory_space<vmem>>, vector<8x8xf32>
    tpu.vector_store %arg8[%c0_19, %c0_20], %29 {strides = array<i32>} : memref<8x8xf32, #tpu.memory_space<vmem>>, vector<8x8xf32>,
    return
  }
  func.func @transform_0(%arg0: i32) -> (i32, i32) {
    %c0_i32 = arith.constant 0 : i32
    %c0_i32_0 = arith.constant 0 : i32
    return %arg0, %c0_i32 : i32, i32
  }
  func.func @transform_1(%arg0: i32) -> (i32, i32) {
    %c0_i32 = arith.constant 0 : i32
    %c0_i32_0 = arith.constant 0 : i32
    %c0_i32_1 = arith.constant 0 : i32
    return %c0_i32, %c0_i32_0 : i32, i32
  }
  func.func @transform_2(%arg0: i32) -> (i32, i32) {
    %c0_i32 = arith.constant 0 : i32
    %c0_i32_0 = arith.constant 0 : i32
    %c0_i32_1 = arith.constant 0 : i32
    return %c0_i32, %c0_i32_0 : i32, i32
  }
  func.func @transform_3(%arg0: i32) -> (i32, i32) {
    %c0_i32 = arith.constant 0 : i32
    %c0_i32_0 = arith.constant 0 : i32
    %c0_i32_1 = arith.constant 0 : i32
    return %c0_i32, %c0_i32_0 : i32, i32
  }
  func.func @transform_4(%arg0: i32) -> (i32, i32) {
    %c0_i32 = arith.constant 0 : i32
    %c0_i32_0 = arith.constant 0 : i32
    %c0_i32_1 = arith.constant 0 : i32
    return %c0_i32, %c0_i32_0 : i32, i32
  }
  func.func @transform_5(%arg0: i32) -> (i32, i32) {
    %c0_i32 = arith.constant 0 : i32
    %c0_i32_0 = arith.constant 0 : i32
    %c0_i32_1 = arith.constant 0 : i32
    return %c0_i32, %c0_i32_0 : i32, i32
  }
  func.func @transform_6(%arg0: i32) -> (i32, i32) {
    %c0_i32 = arith.constant 0 : i32
    %c0_i32_0 = arith.constant 0 : i32
    %c0_i32_1 = arith.constant 0 : i32
    return %c0_i32, %c0_i32_0 : i32, i32
  }
  func.func @transform_7(%arg0: i32) -> (i32, i32) {
    %c0_i32 = arith.constant 0 : i32
    %c0_i32_0 = arith.constant 0 : i32
    return %arg0, %c0_i32 : i32, i32
  }
}

module attributes {stable_mosaic.version = 11 : i64} {
  func.func @dqn_2lx_kernel(%arg0: i32, %arg1: memref<8x16xf32, #tpu.memory_space<vmem>>, %arg2: memref<16x32xf32, #tpu.memory_space<vmem>>, %arg3: memref<1x32xf32, #tpu.memory_space<vmem>>, %arg4: memref<32x32xf32, #tpu.memory_space<vmem>>, %arg5: memref<1x32xf32, #tpu.memory_space<vmem>>, %arg6: memref<32x8xf32, #tpu.memory_space<vmem>>, %arg7: memref<1x8xf32, #tpu.memory_space<vmem>>, %arg8: memref<8x8xf32, #tpu.memory_space<vmem>>) attributes {dimension_semantics = [#tpu.dimension_semantics<arbitrary>], iteration_bounds = array<i64: 1>, scalar_prefetch = 0 : i64, scratch_operands = 0 : i64, tpu.core_type = #tpu.core_type<tc>, window_params = [{transform_indices = @transform_0, window_bounds = array<i64: 8, 16>}, {pipeline_mode = #tpu.pipeline_mode<synchronous>, transform_indices = @transform_1, window_bounds = array<i64: 16, 32>}, {pipeline_mode = #tpu.pipeline_mode<synchronous>, transform_indices = @transform_2, window_bounds = array<i64: 1, 32>}, {pipeline_mode = #tpu.pipeline_mode<synchronous>, transform_indices = @transform_3, window_bounds = array<i64: 32, 32>}, {pipeline_mode = #tpu.pipeline_mode<synchronous>, transform_indices = @transform_4, window_bounds = array<i64: 1, 32>}, {pipeline_mode = #tpu.pipeline_mode<synchronous>, transform_indices = @transform_5, window_bounds = array<i64: 32, 8>}, {pipeline_mode = #tpu.pipeline_mode<synchronous>, transform_indices = @transform_6, window_bounds = array<i64: 1, 8>}, {transform_indices = @transform_7, window_bounds = array<i64: 8, 8>}]} {
    %c0 = arith.constant 0 : index
    %c0_0 = arith.constant 0 : index
    %0 = vector.load %arg1[%c0, %c0_0] : memref<8x16xf32, #tpu.memory_space<vmem>>, vector<8x16xf32>
    %c0_1 = arith.constant 0 : index
    %c0_2 = arith.constant 0 : index
    %1 = vector.load %arg2[%c0_1, %c0_2] : memref<16x32xf32, #tpu.memory_space<vmem>>, vector<16x32xf32>
    %cst = arith.constant dense<0.000000e+00> : vector<8x32xf32>
    %2 = tpu.matmul %0, %1, %cst {dimension_numbers = #tpu.dot_dimension_numbers<[1], [0], [0], [1], [0, 0, 1, 1], [], []>} : vector<8x16xf32>, vector<16x32xf32>, vector<8x32xf32> -> vector<8x32xf32>
    %c0_3 = arith.constant 0 : index
    %c0_4 = arith.constant 0 : index
    %3 = vector.load %arg3[%c0_3, %c0_4] : memref<1x32xf32, #tpu.memory_space<vmem>>, vector<1x32xf32>
    %4 = vector.broadcast %3 : vector<1x32xf32> to vector<8x32xf32>
    %5 = arith.addf %2, %4 : vector<8x32xf32>
    %cst_5 = arith.constant 0.000000e+00 : f32
    %6 = vector.broadcast %cst_5 : f32 to vector<8x32xf32>
    %7 = arith.maximumf %5, %6 : vector<8x32xf32>
    %c0_6 = arith.constant 0 : index
    %c0_7 = arith.constant 0 : index
    %8 = vector.load %arg4[%c0_6, %c0_7] : memref<32x32xf32, #tpu.memory_space<vmem>>, vector<32x32xf32>
    %cst_8 = arith.constant dense<0.000000e+00> : vector<8x32xf32>
    %9 = tpu.matmul %7, %8, %cst_8 {dimension_numbers = #tpu.dot_dimension_numbers<[1], [0], [0], [1], [0, 0, 1, 1], [], []>} : vector<8x32xf32>, vector<32x32xf32>, vector<8x32xf32> -> vector<8x32xf32>
    %c0_9 = arith.constant 0 : index
    %c0_10 = arith.constant 0 : index
    %10 = vector.load %arg5[%c0_9, %c0_10] : memref<1x32xf32, #tpu.memory_space<vmem>>, vector<1x32xf32>
    %11 = vector.broadcast %10 : vector<1x32xf32> to vector<8x32xf32>
    %12 = arith.addf %9, %11 : vector<8x32xf32>
    %cst_11 = arith.constant 0.000000e+00 : f32
    %13 = vector.broadcast %cst_11 : f32 to vector<8x32xf32>
    %14 = arith.maximumf %12, %13 : vector<8x32xf32>
    %c0_12 = arith.constant 0 : index
    %c0_13 = arith.constant 0 : index
    %15 = vector.load %arg6[%c0_12, %c0_13] : memref<32x8xf32, #tpu.memory_space<vmem>>, vector<32x8xf32>
    %cst_14 = arith.constant dense<0.000000e+00> : vector<8x8xf32>
    %16 = tpu.matmul %14, %15, %cst_14 {dimension_numbers = #tpu.dot_dimension_numbers<[1], [0], [0], [1], [0, 0, 1, 1], [], []>} : vector<8x32xf32>, vector<32x8xf32>, vector<8x8xf32> -> vector<8x8xf32>
    %c0_15 = arith.constant 0 : index
    %c0_16 = arith.constant 0 : index
    %17 = vector.load %arg7[%c0_15, %c0_16] : memref<1x8xf32, #tpu.memory_space<vmem>>, vector<1x8xf32>
    %18 = vector.broadcast %17 : vector<1x8xf32> to vector<8x8xf32>
    %19 = arith.addf %16, %18 : vector<8x8xf32>
    %cst_17 = arith.constant dense<0xFF800000> : vector<8xf32>
    %20 = vector.multi_reduction <maximumf>, %19, %cst_17 [1] : vector<8x8xf32> to vector<8xf32>
    %21 = vector.shape_cast %20 : vector<8xf32> to vector<8x1xf32>
    %22 = vector.broadcast %21 : vector<8x1xf32> to vector<8x8xf32>
    %23 = arith.subf %19, %22 : vector<8x8xf32>
    %24 = math.exp %23 : vector<8x8xf32>
    %cst_18 = arith.constant dense<0.000000e+00> : vector<8xf32>
    %25 = vector.multi_reduction <add>, %24, %cst_18 [1] : vector<8x8xf32> to vector<8xf32>
    %26 = vector.shape_cast %25 : vector<8xf32> to vector<8x1xf32>
    %27 = tpu.reciprocal %26 : vector<8x1xf32> -> vector<8x1xf32>
    %28 = vector.broadcast %27 : vector<8x1xf32> to vector<8x8xf32>
    %29 = arith.mulf %24, %28 : vector<8x8xf32>
    %c0_19 = arith.constant 0 : index
    %c0_20 = arith.constant 0 : index
    %30 = vector.load %arg8[%c0_19, %c0_20] : memref<8x8xf32, #tpu.memory_space<vmem>>, vector<8x8xf32>
    tpu.vector_store %arg8[%c0_19, %c0_20], %29 {strides = array<i32>} : memref<8x8xf32, #tpu.memory_space<vmem>>, vector<8x8xf32>,
    return
  }
  func.func @transform_0(%arg0: i32) -> (i32, i32) {
    %c0_i32 = arith.constant 0 : i32
    %c0_i32_0 = arith.constant 0 : i32
    return %arg0, %c0_i32 : i32, i32
  }
  func.func @transform_1(%arg0: i32) -> (i32, i32) {
    %c0_i32 = arith.constant 0 : i32
    %c0_i32_0 = arith.constant 0 : i32
    %c0_i32_1 = arith.constant 0 : i32
    return %c0_i32, %c0_i32_0 : i32, i32
  }
  func.func @transform_2(%arg0: i32) -> (i32, i32) {
    %c0_i32 = arith.constant 0 : i32
    %c0_i32_0 = arith.constant 0 : i32
    %c0_i32_1 = arith.constant 0 : i32
    return %c0_i32, %c0_i32_0 : i32, i32
  }
  func.func @transform_3(%arg0: i32) -> (i32, i32) {
    %c0_i32 = arith.constant 0 : i32
    %c0_i32_0 = arith.constant 0 : i32
    %c0_i32_1 = arith.constant 0 : i32
    return %c0_i32, %c0_i32_0 : i32, i32
  }
  func.func @transform_4(%arg0: i32) -> (i32, i32) {
    %c0_i32 = arith.constant 0 : i32
    %c0_i32_0 = arith.constant 0 : i32
    %c0_i32_1 = arith.constant 0 : i32
    return %c0_i32, %c0_i32_0 : i32, i32
  }
  func.func @transform_5(%arg0: i32) -> (i32, i32) {
    %c0_i32 = arith.constant 0 : i32
    %c0_i32_0 = arith.constant 0 : i32
    %c0_i32_1 = arith.constant 0 : i32
    return %c0_i32, %c0_i32_0 : i32, i32
  }
  func.func @transform_6(%arg0: i32) -> (i32, i32) {
    %c0_i32 = arith.constant 0 : i32
    %c0_i32_0 = arith.constant 0 : i32
    %c0_i32_1 = arith.constant 0 : i32
    return %c0_i32, %c0_i32_0 : i32, i32
  }
  func.func @transform_7(%arg0: i32) -> (i32, i32) {
    %c0_i32 = arith.constant 0 : i32
    %c0_i32_0 = arith.constant 0 : i32
    return %arg0, %c0_i32 : i32, i32
  }
}

</mosaic_0001>

<bundles_post_ra>
// kernel: tpu_custom_call.1
= control target key start
LH: loop header
LB: loop body
LE: loop exit
PB: predicated region body
PF: predicated region fallthrough
CT: control target
= control target key end

     0   :  { %12 = vsyncpa [#allocation3], 0  ;;  %s337_s0 = inlined_call_operand.vmem [shape: f32[8,16], index: 0, kind: input, shape index: {}]   ;;  %s338_s1 = inlined_call_operand.hbm [shape: f32[16,32], index: 1, kind: input, shape index: {}]   ;;  %s339_s2 = inlined_call_operand.vmem [shape: f32[1,32], index: 2, kind: input, shape index: {}]   ;;  %s340_s3 = inlined_call_operand.vmem [shape: f32[32,32], index: 3, kind: input, shape index: {}]   ;;  %s341_s4 = inlined_call_operand.vmem [shape: f32[1,32], index: 4, kind: input, shape index: {}]   ;;  %s342_s5 = inlined_call_operand.vmem [shape: f32[32,8], index: 5, kind: input, shape index: {}]   ;;  %s343_s6 = inlined_call_operand.vmem [shape: f32[1,8], index: 6, kind: input, shape index: {}]   ;;  %s344_s7 = inlined_call_operand.hbm [shape: f32[8,8], index: 7, kind: output, shape index: {}]  }
   0x1   :  { %13 = vsyncpa [#allocation4], 0  ;;  %s20_s26 = sshll.u32 %s338_s1, 4  ;;  %s248_s27 = smov [#allocation2]   ;;  %s21_s26 = int_to_ptr.hbm [resolvable:$true] %s20_s26 }
   0x2   :  { %s22_s28 = sshll.u32 %s248_s27, 4  ;;  %s249_s29 = smov 128   ;;  %s23_s28 = int_to_ptr.vmem [resolvable:$true] %s22_s28 }
   0x3   :  { %s250_s30 = smov 8  }
   0x4   :  { %28 = dma.hbm_to_vmem [thread:$0]  %s21_s26, 256, %s23_s28, [#allocation3], %s249_s29, %s249_s29, %s250_s30  }
   0x5   :  { %244 = dma.done.wait [#allocation3], 256  }
   0x6   :  { %245 = vsyncadd [#allocation3], 4294967040  ;;  %v45_v0 = vld [vmem:[#allocation2 + $0x8] sm:$0xff]  ;;  %v44_v1 = vld [vmem:[#allocation2] sm:$0xff]  ;;  %vm50_vm0 = vcmask 130048   ;;  %vm83_vm1 = vcmask 261120  }
   0x7   :  { %68 = vmatpush.msra.mxu0 %v45_v0  ;;  %v43_v2 = vld [vmem:[%s337_s0] sm:$0xff]  ;;  %v78_v3 = vld [vmem:[%s340_s3 + $0x18] sm:$0xff]  ;;  %v77_v4 = vld [vmem:[%s340_s3 + $0x10] sm:$0xff]  ;;  %vm139_vm2 = vcmask 64512   ;;  %s172_s29 = sshll.u32 %s344_s7, 4  ;;  %s173_s29 = int_to_ptr.hbm [resolvable:$true] %s172_s29 }
   0x8   :  { %99 = vmatpush.msra.mxu1 %v78_v3  ;;  %v76_v5 = vld [vmem:[%s340_s3 + $0x8] sm:$0xff]  ;;  %v75_v6 = vld [vmem:[%s340_s3] sm:$0xff]  ;;  %v111_v7 = vld [vmem:[%s342_s5 + $0x18] sm:$0xff] }
   0x9   :  { %69 = vmatpush.msra.mxu0 %v44_v1  ;;  %131 = vmatpush.msra.mxu2 %v111_v7  ;;  %v189_v8 = vld [vmem:[%s339_s2] ss:$0 sm:$0xff]  ;;  %v110_v12 = vld [vmem:[%s342_s5 + $0x10] sm:$0xff]  ;;  %v109_v13 = vld [vmem:[%s342_s5 + $0x8] sm:$0xff] }
   0xa   :  { %182 = vmatmul.msk.f32.vlgmr.msra.gmra.mxu0 %vm50_vm0, %v43_v2  ;;  %100 = vmatpush.msra.mxu1 %v77_v4  ;;  %v108_v14 = vld [vmem:[%s342_s5] sm:$0xff] }
   0xb   :  { %132 = vmatpush.msra.mxu2 %v110_v12  ;;  %v190_v15 = vld [vmem:[%s341_s4] ss:$0 sm:$0xff]  ;;  %s251_s4 = smov [#allocation5]  }
   0xc   :  { %101 = vmatpush.msra.mxu1 %v76_v5  ;;  %v191_v19 = vld [vmem:[%s343_s6] ss:$0 sm:$0xff]  ;;  %s170_s5 = sshll.u32 %s251_s4, 4  ;;  %s171_s5 = int_to_ptr.vmem [resolvable:$true] %s170_s5 }
   0xd   :  { %133 = vmatpush.msra.mxu2 %v109_v13 }
   0xe   :  { %102 = vmatpush.msra.mxu1 %v75_v6 }
   0xf   :  { %134 = vmatpush.msra.mxu2 %v108_v14 }
  0x87   :  { %v71_v9 = vpop.f32.mrf.mxu0 }
  0x88   :  { %v72_v10 = vadd.f32 %v189_v8, %v71_v9 }
  0x8a   :  { %v74_v11 = vmax.f32 %v72_v10, 0.0 }
  0x8c   :  { %183 = vmatmul.msk.f32.vlgmr.msra.gmra.mxu1 %vm83_vm1, %v74_v11 }
 0x109   :  { %v104_v16 = vpop.f32.mrf.mxu1 }
 0x10a   :  { %v105_v17 = vadd.f32 %v190_v15, %v104_v16 }
 0x10c   :  { %v107_v18 = vmax.f32 %v105_v17, 0.0 }
 0x10e   :  { %184 = vmatmul.msk.f32.vlgmr.msra.gmra.mxu2 %vm83_vm1, %v107_v18 }
 0x191   :  { %v136_v20 = vpop.f32.mrf.mxu2 }
 0x192   :  { %v137_v21 = vadd.f32 %v191_v19, %v136_v20 }
 0x194   :  { %v140_v22 = vsel %vm139_vm2, %v137_v21, -inf }
 0x195   :  { %141 = vmax.xlane.f32.xlu0 %v140_v22 }
 0x208   :  { %v142_v23 = vpop.xlane.xlu0 %141 }
 0x209   :  { %v143_v24 = vsub.f32 %v137_v21, %v142_v23 }
 0x20b   :  { %v144_v25 = vmul.f32 1.442695, %v143_v24 }
 0x20d   :  { %192 = vpow2.f32 %v144_v25 }
 0x213   :  { %v193_v26 = vpop.eup %192 }
 0x214   :  { %v146_v27 = vsel %vm139_vm2, %v193_v26, 0.0 }
 0x215   :  { %147 = vadd.xlane.f32.xlu0 %v146_v27 }
 0x288   :  { %v148_v28 = vpop.xlane.xlu0 %147 }
 0x289   :  { %194 = vrcp.f32 %v148_v28  ;;  %v160_v32 = vand.u32 2147483648, %v148_v28  ;;  %v158_v34 = vand.u32 2147483647, %v148_v28  ;;  %vm154_vm4 = vweird.f32 %v148_v28 }
 0x28b   :  { %v161_v36 = vor.u32 1.1754944e-38, %v160_v32  ;;  %vm159_vm6 = vcmp.eq.f32.partialorder %v158_v34, 8.507059e+37 }
 0x28f   :  { %v195_v29 = vpop.eup %194 }
 0x290   :  { %v150_v30 = vmul.f32 %v195_v29, %v148_v28  ;;  %vm155_vm3 = vweird.f32 %v195_v29 }
 0x291   :  { %vm156_vm5 = vmor %vm154_vm4, %vm155_vm3 }
 0x292   :  { %v151_v31 = vsub.f32 1.0, %v150_v30 }
 0x294   :  { %v152_v33 = vmul.f32 %v195_v29, %v151_v31 }
 0x296   :  { %v153_v35 = vadd.f32 %v195_v29, %v152_v33 }
 0x298   :  { %v157_v37 = vsel %vm156_vm5, %v195_v29, %v153_v35 }
 0x299   :  { %v162_v38 = vsel %vm159_vm6, %v161_v36, %v157_v37 }
 0x29a   :  { %v163_v39 = vmul.f32 %v193_v26, %v162_v38 }
 0x29c   :  { %164 = vst.msk [vmem:[#allocation5] sm:$0xff] %vm139_vm2, %v163_v39 }
 0x29d   :  { %175 = dma.vmem_to_hbm [thread:$0]  %s171_s5, 128, %s173_s29, [#allocation4]  }
 0x29e   :  { %246 = dma.done.wait [#allocation4], 128  }
 0x29f   :  { %247 = vsyncadd [#allocation4], 4294967168 }
 0x2a0   :  { %180 = vsyncpa [#allocation3], 1 }
 0x2a1   :  { %181 = vsyncpa [#allocation4], 1 }

// kernel: tpu_custom_call.1
= control target key start
LH: loop header
LB: loop body
LE: loop exit
PB: predicated region body
PF: predicated region fallthrough
CT: control target
= control target key end

     0   :  { %12 = vsyncpa [#allocation3], 0  ;;  %s337_s0 = inlined_call_operand.vmem [shape: f32[8,16], index: 0, kind: input, shape index: {}]   ;;  %s338_s1 = inlined_call_operand.hbm [shape: f32[16,32], index: 1, kind: input, shape index: {}]   ;;  %s339_s2 = inlined_call_operand.vmem [shape: f32[1,32], index: 2, kind: input, shape index: {}]   ;;  %s340_s3 = inlined_call_operand.vmem [shape: f32[32,32], index: 3, kind: input, shape index: {}]   ;;  %s341_s4 = inlined_call_operand.vmem [shape: f32[1,32], index: 4, kind: input, shape index: {}]   ;;  %s342_s5 = inlined_call_operand.vmem [shape: f32[32,8], index: 5, kind: input, shape index: {}]   ;;  %s343_s6 = inlined_call_operand.vmem [shape: f32[1,8], index: 6, kind: input, shape index: {}]   ;;  %s344_s7 = inlined_call_operand.hbm [shape: f32[8,8], index: 7, kind: output, shape index: {}]  }
   0x1   :  { %13 = vsyncpa [#allocation4], 0  ;;  %s20_s26 = sshll.u32 %s338_s1, 4  ;;  %s248_s27 = smov [#allocation2]   ;;  %s21_s26 = int_to_ptr.hbm [resolvable:$true] %s20_s26 }
   0x2   :  { %s22_s28 = sshll.u32 %s248_s27, 4  ;;  %s249_s29 = smov 128   ;;  %s23_s28 = int_to_ptr.vmem [resolvable:$true] %s22_s28 }
   0x3   :  { %s250_s30 = smov 8  }
   0x4   :  { %28 = dma.hbm_to_vmem [thread:$0]  %s21_s26, 256, %s23_s28, [#allocation3], %s249_s29, %s249_s29, %s250_s30  }
   0x5   :  { %244 = dma.done.wait [#allocation3], 256  }
   0x6   :  { %245 = vsyncadd [#allocation3], 4294967040  ;;  %v45_v0 = vld [vmem:[#allocation2 + $0x8] sm:$0xff]  ;;  %v44_v1 = vld [vmem:[#allocation2] sm:$0xff]  ;;  %vm50_vm0 = vcmask 130048   ;;  %vm83_vm1 = vcmask 261120  }
   0x7   :  { %68 = vmatpush.msra.mxu0 %v45_v0  ;;  %v43_v2 = vld [vmem:[%s337_s0] sm:$0xff]  ;;  %v78_v3 = vld [vmem:[%s340_s3 + $0x18] sm:$0xff]  ;;  %v77_v4 = vld [vmem:[%s340_s3 + $0x10] sm:$0xff]  ;;  %vm139_vm2 = vcmask 64512   ;;  %s172_s29 = sshll.u32 %s344_s7, 4  ;;  %s173_s29 = int_to_ptr.hbm [resolvable:$true] %s172_s29 }
   0x8   :  { %99 = vmatpush.msra.mxu1 %v78_v3  ;;  %v76_v5 = vld [vmem:[%s340_s3 + $0x8] sm:$0xff]  ;;  %v75_v6 = vld [vmem:[%s340_s3] sm:$0xff]  ;;  %v111_v7 = vld [vmem:[%s342_s5 + $0x18] sm:$0xff] }
   0x9   :  { %69 = vmatpush.msra.mxu0 %v44_v1  ;;  %131 = vmatpush.msra.mxu2 %v111_v7  ;;  %v189_v8 = vld [vmem:[%s339_s2] ss:$0 sm:$0xff]  ;;  %v110_v12 = vld [vmem:[%s342_s5 + $0x10] sm:$0xff]  ;;  %v109_v13 = vld [vmem:[%s342_s5 + $0x8] sm:$0xff] }
   0xa   :  { %182 = vmatmul.msk.f32.vlgmr.msra.gmra.mxu0 %vm50_vm0, %v43_v2  ;;  %100 = vmatpush.msra.mxu1 %v77_v4  ;;  %v108_v14 = vld [vmem:[%s342_s5] sm:$0xff] }
   0xb   :  { %132 = vmatpush.msra.mxu2 %v110_v12  ;;  %v190_v15 = vld [vmem:[%s341_s4] ss:$0 sm:$0xff]  ;;  %s251_s4 = smov [#allocation5]  }
   0xc   :  { %101 = vmatpush.msra.mxu1 %v76_v5  ;;  %v191_v19 = vld [vmem:[%s343_s6] ss:$0 sm:$0xff]  ;;  %s170_s5 = sshll.u32 %s251_s4, 4  ;;  %s171_s5 = int_to_ptr.vmem [resolvable:$true] %s170_s5 }
   0xd   :  { %133 = vmatpush.msra.mxu2 %v109_v13 }
   0xe   :  { %102 = vmatpush.msra.mxu1 %v75_v6 }
   0xf   :  { %134 = vmatpush.msra.mxu2 %v108_v14 }
  0x87   :  { %v71_v9 = vpop.f32.mrf.mxu0 }
  0x88   :  { %v72_v10 = vadd.f32 %v189_v8, %v71_v9 }
  0x8a   :  { %v74_v11 = vmax.f32 %v72_v10, 0.0 }
  0x8c   :  { %183 = vmatmul.msk.f32.vlgmr.msra.gmra.mxu1 %vm83_vm1, %v74_v11 }
 0x109   :  { %v104_v16 = vpop.f32.mrf.mxu1 }
 0x10a   :  { %v105_v17 = vadd.f32 %v190_v15, %v104_v16 }
 0x10c   :  { %v107_v18 = vmax.f32 %v105_v17, 0.0 }
 0x10e   :  { %184 = vmatmul.msk.f32.vlgmr.msra.gmra.mxu2 %vm83_vm1, %v107_v18 }
 0x191   :  { %v136_v20 = vpop.f32.mrf.mxu2 }
 0x192   :  { %v137_v21 = vadd.f32 %v191_v19, %v136_v20 }
 0x194   :  { %v140_v22 = vsel %vm139_vm2, %v137_v21, -inf }
 0x195   :  { %141 = vmax.xlane.f32.xlu0 %v140_v22 }
 0x208   :  { %v142_v23 = vpop.xlane.xlu0 %141 }
 0x209   :  { %v143_v24 = vsub.f32 %v137_v21, %v142_v23 }
 0x20b   :  { %v144_v25 = vmul.f32 1.442695, %v143_v24 }
 0x20d   :  { %192 = vpow2.f32 %v144_v25 }
 0x213   :  { %v193_v26 = vpop.eup %192 }
 0x214   :  { %v146_v27 = vsel %vm139_vm2, %v193_v26, 0.0 }
 0x215   :  { %147 = vadd.xlane.f32.xlu0 %v146_v27 }
 0x288   :  { %v148_v28 = vpop.xlane.xlu0 %147 }
 0x289   :  { %194 = vrcp.f32 %v148_v28  ;;  %v160_v32 = vand.u32 2147483648, %v148_v28  ;;  %v158_v34 = vand.u32 2147483647, %v148_v28  ;;  %vm154_vm4 = vweird.f32 %v148_v28 }
 0x28b   :  { %v161_v36 = vor.u32 1.1754944e-38, %v160_v32  ;;  %vm159_vm6 = vcmp.eq.f32.partialorder %v158_v34, 8.507059e+37 }
 0x28f   :  { %v195_v29 = vpop.eup %194 }
 0x290   :  { %v150_v30 = vmul.f32 %v195_v29, %v148_v28  ;;  %vm155_vm3 = vweird.f32 %v195_v29 }
 0x291   :  { %vm156_vm5 = vmor %vm154_vm4, %vm155_vm3 }
 0x292   :  { %v151_v31 = vsub.f32 1.0, %v150_v30 }
 0x294   :  { %v152_v33 = vmul.f32 %v195_v29, %v151_v31 }
 0x296   :  { %v153_v35 = vadd.f32 %v195_v29, %v152_v33 }
 0x298   :  { %v157_v37 = vsel %vm156_vm5, %v195_v29, %v153_v35 }
 0x299   :  { %v162_v38 = vsel %vm159_vm6, %v161_v36, %v157_v37 }
 0x29a   :  { %v163_v39 = vmul.f32 %v193_v26, %v162_v38 }
 0x29c   :  { %164 = vst.msk [vmem:[#allocation5] sm:$0xff] %vm139_vm2, %v163_v39 }
 0x29d   :  { %175 = dma.vmem_to_hbm [thread:$0]  %s171_s5, 128, %s173_s29, [#allocation4]  }
 0x29e   :  { %246 = dma.done.wait [#allocation4], 128  }
 0x29f   :  { %247 = vsyncadd [#allocation4], 4294967168 }
 0x2a0   :  { %180 = vsyncpa [#allocation3], 1 }
 0x2a1   :  { %181 = vsyncpa [#allocation4], 1 }

</bundles_post_ra>
